<compile_context>
chip_gen: v7x
topology: tpu7x:2x2x1
jax: 0.10.0
libtpu: 0.0.40
codegen_flags: <defaults>
</compile_context>

<pallas_src>
import functools

import jax
import jax.numpy as jnp
from jax import lax
from jax.experimental import pallas as pl
from jax.experimental.pallas import tpu as pltpu

# ---- deterministic "parameters" from __init__ -------------------------------
ALPHA = 2.0
BETA = 1.0
LAMBDA_MIN = 0.2
LAMBDA_MAX = 0.7
CON = 1.0

# Sobel kernels (same as the torch tensors Gx, Gy) -- used by the reference.
GX = ((-1.0, 0.0, 1.0),
      (-2.0, 0.0, 2.0),
      (-1.0, 0.0, 1.0))
GY = ((-1.0, -2.0, -1.0),
      ( 0.0,  0.0,  0.0),
      ( 1.0,  2.0,  1.0))


def _sobel_kernel(x_ref, o_ref, *, H, W, alpha, beta, lam_min, lam_max, con):
    """Grid = (N // nb,).

    x_ref : (nb, Cin, H*W)  nb images, all in-channels, flattened spatial
    o_ref : (nb, 1, H*W)    one edge map per image (all Cout planes identical)
    """
    HW = H * W

    # Channel sum in-register (weights identical across channels => linear).
    xs = jnp.sum(x_ref[...].astype(jnp.float32), axis=1)        # (nb, HW)
    zero = jnp.zeros_like(xs)

    # Edge masks for the padding=1 zero halo, computed once and reused.
    idx = lax.broadcasted_iota(jnp.int32, xs.shape, 1)            # flat i*W + j
    col = idx % W
    m_top = idx < W                      # row i == 0
    m_bot = idx >= (H - 1) * W           # row i == H-1
    m_left = col == 0                    # col j == 0
    m_right = col == W - 1               # col j == W-1

    # Zero-padded vertical neighbours via XLU lane rolls on the flat layout.
    up = jnp.where(m_top, zero, pltpu.roll(xs, W, axis=1))        # x[i-1, j]
    down = jnp.where(m_bot, zero, pltpu.roll(xs, HW - W, axis=1))  # x[i+1, j]

    # Separable Sobel: vertical pass.
    s = up + 2.0 * xs + down             # [1, 2, 1]^T  (for Gx)
    d = down - up                        # [-1, 0, 1]^T (for Gy)

    # Zero-padded horizontal neighbours.
    s_l = jnp.where(m_left, zero, pltpu.roll(s, 1, axis=1))        # s[i, j-1]
    s_r = jnp.where(m_right, zero, pltpu.roll(s, HW - 1, axis=1))  # s[i, j+1]
    d_l = jnp.where(m_left, zero, pltpu.roll(d, 1, axis=1))
    d_r = jnp.where(m_right, zero, pltpu.roll(d, HW - 1, axis=1))

    gx = s_r - s_l                       # Gx = [1,2,1]^T (x) [-1,0,1]
    gy = d_l + 2.0 * d + d_r             # Gy = [-1,0,1]^T (x) [1,2,1]

    mag = jnp.sqrt(gx * gx + gy * gy)
    x_temp = (1.0 - (mag - lam_min) / (lam_max - lam_min)) * alpha + beta
    x_final = jnp.where((mag > lam_min) & (mag < lam_max), x_temp, con)

    o_ref[:, 0, :] = x_final.astype(o_ref.dtype)


def _pick_nb(n, bytes_per_image, cap_bytes=4 << 20):
    """Largest batch sub-tile that divides N, keeps the input DMA <= ~4 MiB,
    and leaves >= 2 grid steps when N >= 2 (pipelining + v7x megacore)."""
    if n <= 1:
        return 1
    max_nb = max(1, n // 2)
    best = 1
    for nb in range(1, max_nb + 1):
        if n % nb == 0 and nb * bytes_per_image <= cap_bytes:
            best = nb
    return best


def sobel_filter(x, out_channels):
    """x: (N, Cin, H, W) float -> (N, Cout, H, W), dtype follows x."""
    N, Cin, H, W = x.shape
    HW = H * W
    out_dtype = x.dtype
    itemsize = jnp.dtype(x.dtype).itemsize

    # Free reshape (merge contiguous minor dims) -> lane-dense layout.
    x_flat = x.reshape(N, Cin, HW)

    nb = _pick_nb(N, Cin * HW * itemsize)
    grid = (N // nb,)

    kernel = functools.partial(
        _sobel_kernel, H=H, W=W,
        alpha=ALPHA, beta=BETA, lam_min=LAMBDA_MIN, lam_max=LAMBDA_MAX,
        con=CON)

    in_bytes = int(x.size) * itemsize
    out_bytes = N * HW * itemsize
    cost = pl.CostEstimate(
        flops=int(N * HW * (Cin + 20)),   # channel sum + separable sobel + threshold
        transcendentals=int(N * HW),      # sqrt
        bytes_accessed=int(in_bytes + out_bytes))

    edge = pl.pallas_call(
        kernel,
        out_shape=jax.ShapeDtypeStruct((N, 1, HW), out_dtype),
        grid_spec=pltpu.PrefetchScalarGridSpec(
            num_scalar_prefetch=0,
            grid=grid,
            in_specs=[pl.BlockSpec((nb, Cin, HW), lambda n: (n, 0, 0))],
            out_specs=pl.BlockSpec((nb, 1, HW), lambda n: (n, 0, 0)),
        ),
        compiler_params=pltpu.CompilerParams(
            dimension_semantics=("parallel",),
            vmem_limit_bytes=32 * 1024 * 1024),
        cost_estimate=cost,
    )(x_flat)

    # Every output channel is identical (weights repeated over out_channels);
    # broadcast outside the kernel so HBM writes stay single-channel.
    edge = edge.reshape(N, 1, H, W)
    return jnp.broadcast_to(edge, (N, out_channels, H, W))


def _reference(x, out_channels):
    """Pure-JAX reference replicating the PyTorch forward exactly."""
    N, Cin, H, W = x.shape
    xf = x.astype(jnp.float32)
    gx_k = jnp.array(GX, jnp.float32)
    gy_k = jnp.array(GY, jnp.float32)
    wx = jnp.broadcast_to(gx_k[None, None], (out_channels, Cin, 3, 3))
    wy = jnp.broadcast_to(gy_k[None, None], (out_channels, Cin, 3, 3))
    dn = jax.lax.conv_dimension_numbers(xf.shape, wx.shape,
                                        ("NCHW", "OIHW", "NCHW"))
    gx = jax.lax.conv_general_dilated(xf, wx, (1, 1), ((1, 1), (1, 1)),
                                      dimension_numbers=dn)
    gy = jax.lax.conv_general_dilated(xf, wy, (1, 1), ((1, 1), (1, 1)),
                                      dimension_numbers=dn)
    mag = jnp.sqrt(gx * gx + gy * gy)
    x_temp = (1.0 - (mag - LAMBDA_MIN) / (LAMBDA_MAX - LAMBDA_MIN)) * ALPHA + BETA
    return jnp.where((mag > LAMBDA_MIN) & (mag < LAMBDA_MAX), x_temp, CON)


if __name__ == "__main__":
    key = jax.random.PRNGKey(0)

    # Config 1: generic small shapes.
    N, Cin, Cout, H, W = 2, 4, 3, 16, 16
    x = jax.random.normal(key, (N, Cin, H, W), dtype=jnp.float32)
    out = jax.block_until_ready(sobel_filter(x, Cout))
    ref = _reference(x, Cout)
    assert out.shape == (N, Cout, H, W)
    assert out.dtype == x.dtype
    assert jnp.allclose(out, ref, atol=1e-4, rtol=1e-4), "mismatch (config 1)"

    # Config 2: the configuration ResUNet actually uses (Sobel_filter(3, 1)).
    x2 = jax.random.normal(jax.random.PRNGKey(0), (2, 3, 16, 16), jnp.float32)
    out2 = jax.block_until_ready(sobel_filter(x2, 1))
    ref2 = _reference(x2, 1)
    assert out2.shape == (2, 1, 16, 16)
    assert jnp.allclose(out2, ref2, atol=1e-4, rtol=1e-4), "mismatch (config 2)"

    # Config 3: non-128-aligned spatial dims + odd batch (exercises masks,
    # non-aligned lane rolls, and the nb=1 / grid=(3,) path).
    x3 = jax.random.normal(jax.random.PRNGKey(0), (3, 3, 12, 20), jnp.float32)
    out3 = jax.block_until_ready(sobel_filter(x3, 2))
    ref3 = _reference(x3, 2)
    assert out3.shape == (3, 2, 12, 20)
    assert jnp.allclose(out3, ref3, atol=1e-4, rtol=1e-4), "mismatch (config 3)"

    print("KERNEL_OK")
</pallas_src>

<mosaic_0001>
module attributes {stable_mosaic.version = 11 : i64} {
  func.func @_sobel_kernel(%arg0: i32, %arg1: memref<1x4x256xf32, #tpu.memory_space<vmem>>, %arg2: memref<1x1x256xf32, #tpu.memory_space<vmem>>) attributes {dimension_semantics = [#tpu.dimension_semantics<parallel>], iteration_bounds = array<i64: 2>, scalar_prefetch = 0 : i64, scratch_operands = 0 : i64, tpu.core_type = #tpu.core_type<tc>, window_params = [{transform_indices = @transform_0, window_bounds = array<i64: 1, 4, 256>}, {transform_indices = @transform_1, window_bounds = array<i64: 1, 1, 256>}]} {
    %c0 = arith.constant 0 : index
    %c0_0 = arith.constant 0 : index
    %c0_1 = arith.constant 0 : index
    %0 = vector.load %arg1[%c0, %c0_0, %c0_1] : memref<1x4x256xf32, #tpu.memory_space<vmem>>, vector<1x4x256xf32>
    %cst = arith.constant dense<0.000000e+00> : vector<1x256xf32>
    %1 = vector.multi_reduction <add>, %0, %cst [1] : vector<1x4x256xf32> to vector<1x256xf32>
    %cst_2 = arith.constant 0.000000e+00 : f32
    %2 = vector.broadcast %cst_2 : f32 to vector<1x256xf32>
    %3 = tpu.iota {dimensions = array<i32: 1>} : vector<1x256xi32>
    %c16_i32 = arith.constant 16 : i32
    %c0_i32 = arith.constant 0 : i32
    %4 = arith.cmpi eq, %c16_i32, %c0_i32 : i32
    %c1_i32 = arith.constant 1 : i32
    %5 = arith.select %4, %c1_i32, %c16_i32 : i32
    %6 = vector.broadcast %5 : i32 to vector<1x256xi32>
    %7 = arith.remsi %3, %6 : vector<1x256xi32>
    %c0_i32_3 = arith.constant 0 : i32
    %8 = vector.broadcast %c0_i32_3 : i32 to vector<1x256xi32>
    %9 = arith.cmpi ne, %7, %8 : vector<1x256xi32>
    %c0_i32_4 = arith.constant 0 : i32
    %10 = vector.broadcast %c0_i32_4 : i32 to vector<1x256xi32>
    %11 = arith.cmpi slt, %7, %10 : vector<1x256xi32>
    %c0_i32_5 = arith.constant 0 : i32
    %12 = arith.cmpi slt, %5, %c0_i32_5 : i32
    %13 = vector.broadcast %12 : i1 to vector<1x256xi1>
    %14 = vector.broadcast %13 : vector<1x256xi1> to vector<1x256xi1>
    %15 = arith.xori %11, %14 : vector<1x256xi1>
    %16 = arith.andi %15, %9 : vector<1x256xi1>
    %17 = vector.broadcast %5 : i32 to vector<1x256xi32>
    %18 = arith.addi %7, %17 : vector<1x256xi32>
    %19 = arith.select %16, %18, %7 : vector<1x256xi1>, vector<1x256xi32>
    %c16_i32_6 = arith.constant 16 : i32
    %20 = vector.broadcast %c16_i32_6 : i32 to vector<1x256xi32>
    %21 = arith.cmpi slt, %3, %20 : vector<1x256xi32>
    %c240_i32 = arith.constant 240 : i32
    %22 = vector.broadcast %c240_i32 : i32 to vector<1x256xi32>
    %23 = arith.cmpi sge, %3, %22 : vector<1x256xi32>
    %c0_i32_7 = arith.constant 0 : i32
    %24 = vector.broadcast %c0_i32_7 : i32 to vector<1x256xi32>
    %25 = arith.cmpi eq, %19, %24 : vector<1x256xi32>
    %c15_i32 = arith.constant 15 : i32
    %26 = vector.broadcast %c15_i32 : i32 to vector<1x256xi32>
    %27 = arith.cmpi eq, %19, %26 : vector<1x256xi32>
    %c16_i32_8 = arith.constant 16 : i32
    %28 = tpu.dynamic_rotate %1 by %c16_i32_8 dim 1 : vector<1x256xf32>, i32 -> vector<1x256xf32>
    %29 = arith.select %21, %2, %28 : vector<1x256xi1>, vector<1x256xf32>
    %c240_i32_9 = arith.constant 240 : i32
    %30 = tpu.dynamic_rotate %1 by %c240_i32_9 dim 1 : vector<1x256xf32>, i32 -> vector<1x256xf32>
    %31 = arith.select %23, %2, %30 : vector<1x256xi1>, vector<1x256xf32>
    %cst_10 = arith.constant 2.000000e+00 : f32
    %32 = vector.broadcast %cst_10 : f32 to vector<1x256xf32>
    %33 = arith.mulf %32, %1 : vector<1x256xf32>
    %34 = arith.addf %29, %33 : vector<1x256xf32>
    %35 = arith.addf %34, %31 : vector<1x256xf32>
    %36 = arith.subf %31, %29 : vector<1x256xf32>
    %c1_i32_11 = arith.constant 1 : i32
    %37 = tpu.dynamic_rotate %35 by %c1_i32_11 dim 1 : vector<1x256xf32>, i32 -> vector<1x256xf32>
    %38 = arith.select %25, %2, %37 : vector<1x256xi1>, vector<1x256xf32>
    %c255_i32 = arith.constant 255 : i32
    %39 = tpu.dynamic_rotate %35 by %c255_i32 dim 1 : vector<1x256xf32>, i32 -> vector<1x256xf32>
    %40 = arith.select %27, %2, %39 : vector<1x256xi1>, vector<1x256xf32>
    %c1_i32_12 = arith.constant 1 : i32
    %41 = tpu.dynamic_rotate %36 by %c1_i32_12 dim 1 : vector<1x256xf32>, i32 -> vector<1x256xf32>
    %42 = arith.select %25, %2, %41 : vector<1x256xi1>, vector<1x256xf32>
    %c255_i32_13 = arith.constant 255 : i32
    %43 = tpu.dynamic_rotate %36 by %c255_i32_13 dim 1 : vector<1x256xf32>, i32 -> vector<1x256xf32>
    %44 = arith.select %27, %2, %43 : vector<1x256xi1>, vector<1x256xf32>
    %45 = arith.subf %40, %38 : vector<1x256xf32>
    %cst_14 = arith.constant 2.000000e+00 : f32
    %46 = vector.broadcast %cst_14 : f32 to vector<1x256xf32>
    %47 = arith.mulf %46, %36 : vector<1x256xf32>
    %48 = arith.addf %42, %47 : vector<1x256xf32>
    %49 = arith.addf %48, %44 : vector<1x256xf32>
    %50 = arith.mulf %45, %45 : vector<1x256xf32>
    %51 = arith.mulf %49, %49 : vector<1x256xf32>
    %52 = arith.addf %50, %51 : vector<1x256xf32>
    %53 = math.sqrt %52 : vector<1x256xf32>
    %cst_15 = arith.constant 2.000000e-01 : f32
    %54 = vector.broadcast %cst_15 : f32 to vector<1x256xf32>
    %55 = arith.subf %53, %54 : vector<1x256xf32>
    %cst_16 = arith.constant 5.000000e-01 : f32
    %56 = vector.broadcast %cst_16 : f32 to vector<1x256xf32>
    %57 = arith.divf %55, %56 : vector<1x256xf32>
    %cst_17 = arith.constant 1.000000e+00 : f32
    %58 = vector.broadcast %cst_17 : f32 to vector<1x256xf32>
    %59 = arith.subf %58, %57 : vector<1x256xf32>
    %cst_18 = arith.constant 2.000000e+00 : f32
    %60 = vector.broadcast %cst_18 : f32 to vector<1x256xf32>
    %61 = arith.mulf %59, %60 : vector<1x256xf32>
    %cst_19 = arith.constant 1.000000e+00 : f32
    %62 = vector.broadcast %cst_19 : f32 to vector<1x256xf32>
    %63 = arith.addf %61, %62 : vector<1x256xf32>
    %cst_20 = arith.constant 2.000000e-01 : f32
    %64 = vector.broadcast %cst_20 : f32 to vector<1x256xf32>
    %65 = arith.cmpf ogt, %53, %64 : vector<1x256xf32>
    %cst_21 = arith.constant 0.699999988 : f32
    %66 = vector.broadcast %cst_21 : f32 to vector<1x256xf32>
    %67 = arith.cmpf olt, %53, %66 : vector<1x256xf32>
    %68 = arith.andi %65, %67 : vector<1x256xi1>
    %cst_22 = arith.constant 1.000000e+00 : f32
    %69 = vector.broadcast %cst_22 : f32 to vector<1x256xf32>
    %70 = arith.select %68, %63, %69 : vector<1x256xi1>, vector<1x256xf32>
    %c0_23 = arith.constant 0 : index
    %c0_24 = arith.constant 0 : index
    %c0_25 = arith.constant 0 : index
    %71 = vector.load %arg2[%c0_23, %c0_24, %c0_25] : memref<1x1x256xf32, #tpu.memory_space<vmem>>, vector<1x1x256xf32>
    %72 = vector.shape_cast %71 : vector<1x1x256xf32> to vector<1x256xf32>
    %73 = vector.shape_cast %70 : vector<1x256xf32> to vector<1x1x256xf32>
    tpu.vector_store %arg2[%c0_23, %c0_24, %c0_25], %73 {strides = array<i32>} : memref<1x1x256xf32, #tpu.memory_space<vmem>>, vector<1x1x256xf32>,
    return
  }
  func.func @transform_0(%arg0: i32) -> (i32, i32, i32) {
    %c0_i32 = arith.constant 0 : i32
    %c0_i32_0 = arith.constant 0 : i32
    %c0_i32_1 = arith.constant 0 : i32
    return %arg0, %c0_i32, %c0_i32_0 : i32, i32, i32
  }
  func.func @transform_1(%arg0: i32) -> (i32, i32, i32) {
    %c0_i32 = arith.constant 0 : i32
    %c0_i32_0 = arith.constant 0 : i32
    %c0_i32_1 = arith.constant 0 : i32
    return %arg0, %c0_i32, %c0_i32_0 : i32, i32, i32
  }
}

</mosaic_0001>

<bundles_post_ra>
// kernel: tpu_custom_call.1
= control target key start
LH: loop header
LB: loop body
LE: loop exit
PB: predicated region body
PF: predicated region fallthrough
CT: control target
= control target key end

     0   :  { %6 = vsyncpa [#allocation3], 0  ;;  %s803_s0 = inlined_call_operand.hbm [shape: f32[2,4,256], index: 0, kind: input, shape index: {}]   ;;  %s804_s1 = inlined_call_operand.hbm [shape: f32[2,1,256], index: 1, kind: output, shape index: {}]  }
   0x1   :  { %8 = vsyncpa [#allocation3 + $0x1], 0 }
   0x2   :  { %9 = vsyncpa [#allocation4], 0 }
   0x3   :  { %11 = vsyncpa [#allocation4 + $0x1], 0  ;;  %s590_s6 = smov 0   ;;  %s592_s7 = smov 0  }
   0x4   :  { %s594_s8 = smov 0   ;;  %s596_s9 = smov 0  }
   0x5 LB: > { %s611_s10 = sadd.s32 4294967295, %s571_s9   ;;  %s401_s11 = sadd.s32 4294967294, %s571_s9   ;;  %s571_s9 = sphi %s596_s9, %s827_s9   ;;  %s567_s8 = sphi %s594_s8, %s826_s8   ;;  %s563_s7 = sphi %s592_s7, %s825_s7   ;;  %s559_s6 = sphi %s590_s6, %s824_s6  }
   0x6   : > { %s615_s12 = sadd.s32 1, %s571_s9   ;;  %s24_s13 = sadd.s32 1, %s567_s8 }
   0x7   : > { %s21_s14 = ssub.s32 %s571_s9, %s615_s12  ;;  %p31_p0 = scmp.ne.s32.totalorder %s567_s8, %s563_s7 }
   0x8   : > { %p22_p1 = scmp.eq.s32.totalorder %s21_s14, 0  ;;  %p32_p2 = scmp.eq.s32.totalorder %s571_s9, 0 }
   0x9   : > { %p37_p3 = scmp.ne.s32.totalorder %s563_s7, %s559_s6  ;;  %p38_p4 = scmp.eq.s32.totalorder %s611_s10, 0 }
   0xa   : > { %s627_s15 = scalar_select %p22_p1, %s567_s8, %s24_s13  }
   0xb   : > { %p629_p5 = por %p32_p2, %p31_p0  ;;  %p633_p6 = por %p38_p4, %p37_p3 }
   0xc   : > { %p61_p7 = scmp.eq.s32.totalorder %s611_s10, 1  ;;  %p67_p8 = scmp.eq.s32.totalorder %s401_s11, 1 }
   0xd   : > { %p431_p10 = scmp.lt.s32.totalorder %s571_s9, 2  ;;  %s87_s20 = sand.u32 1, %s567_s8  }
   0xe   : > { %p640_p11 = por %p61_p7, %p31_p0  ;;  %p644_p12 = por %p67_p8, %p37_p3 }
   0xf   : > { %s417_s21 = sshll.u32 %s571_s9, 7  ;;  %s404_s22 = sshll.u32 %s87_s20, 3 }
  0x10   : > { %s808_s18 = scalar_select %p640_p11, 1, 0 }
  0x11   : > { %s809_s19 = scalar_select %p644_p12, 1, 0 }
  0x12   : > { %s653_s25 = scalar_lea.hbm %s803_s0, %s417_s21  ;;  %s91_s26 = scalar_lea.vmem [#allocation2], %s404_s22 }
  0x13   : > { %s99_s27 = sshll.u32 %s91_s26, 4  ;;  %p657_p13 = pnand %p431_p10, %p629_p5  ;;  %s661_s27 = int_to_ptr.vmem [resolvable:$true] %s99_s27 }
  0x14   : > { %s88_s29 = scalar_lea.sflag [#allocation3], %s87_s20  ;;  %s475_s30 = scalar_lea.hbm %s653_s25, 128 }
  0x15   : > { %p476_p2 = scmp.ne.s32.totalorder %s653_s25, %s475_s30  ;;  %p477_p3 = pneg %p657_p13 }
  0x16   : > { %s480_s4 = scalar_lea.hbm %s803_s0, 256  ;;  %p481_p5 = scmp.lt.u32.totalorder %s653_s25, %s803_s0 }
  0x17   : > { %p478_p4 = pnand %p477_p3, %p476_p2  ;;  %p482_p8 = scmp.lt.u32.totalorder %s480_s4, %s475_s30 }
  0x18   : > { %p484_p9 = scmp.lt.u32.totalorder %s475_s30, %s653_s25 }
  0x19   : > { %p479_p7 = pneg %p478_p4  ;;  %p483_p10 = por %p482_p8, %p481_p5 }
  0x1b   : > { %p485_p0 = por %p484_p9, %p483_p10 }
  0x1d   : > { %p486_p1 = pnand %p485_p0, %p479_p7 }
  0x1f   : > { %489 = shalt.err (!%p486_p1)
}
  0x20   : > { %s490_s13 = scalar_lea.vmem %s661_s27, 128  ;;  %s573_s14 = smov [#allocation2]  }
  0x21   : > { %p491_p2 = scmp.ne.s32.totalorder %s661_s27, %s490_s13  ;;  %s495_s16 = sshll.u32 %s573_s14, 4  ;;  %s496_s16 = int_to_ptr.vmem [resolvable:$false] %s495_s16 }
  0x22   : > { %s497_s20 = scalar_lea.vmem %s496_s16, 256  ;;  %p498_p11 = scmp.lt.s32.totalorder %s661_s27, %s496_s16 }
  0x23   : > { %p493_p4 = pnand %p491_p2, %p477_p3  ;;  %p499_p5 = scmp.lt.s32.totalorder %s497_s20, %s490_s13 }
  0x25   : > { %p494_p12 = pneg %p493_p4  ;;  %p500_p8 = por %p499_p5, %p498_p11 }
  0x27   : > { %p501_p9 = pnand %p500_p8, %p494_p12 }
  0x29   : > { %504 = shalt.err (!%p501_p9)
}
  0x2a   : > { %426 = dma.hbm_to_vmem [thread:$0]  (!%p657_p13), %s653_s25, 128, %s661_s27, %s88_s29  }
  0x2b   : > { %p811_p0 = scmp.lt.s32.totalorder %s571_s9, 3  ;;  %p812_p1 = scmp.ge.s32.totalorder %s571_s9, 1 }
  0x2d   : > { %p105_p3 = pnand %p812_p1, %p811_p0 }
  0x2e   : > { %s695_s21 = sand.u32 (!%p105_p3), 1, %s563_s7  }
  0x2f   : > { %108 = sbr.rel (%p105_p3) target bundleno = 374 (0x176), region = 24  ;;  %s408_s22 = sshll.u32 (!%p105_p3), %s695_s21, 3 }
  0x30   : > { %s111_s23 = scalar_lea.sflag (!%p105_p3), [#allocation3], %s695_s21  ;;  %s114_s24 = scalar_lea.vmem (!%p105_p3), [#allocation2], %s408_s22 }
  0x36   : > { %550 = dma.done.wait (%p633_p6), %s111_s23, 128  }
  0x37   : > { %552 = vsyncadd (%p633_p6), %s111_s23, 4294967168  ;;  %vm137_vm0 = vcmask 1043456   ;;  %v133_v0 = vld [vmem:[%s114_s24] sm:$0xff]  ;;  %s574_s25 = smov 112   ;;  %s575_s17 = smov 16   ;;  %v152_v16 = vlaneseq }
  0x38   : > { %v138_v1 = vsel %vm137_vm0, %v133_v0, 0.0  ;;  %v135_v2 = vcombine.high %v133_v0, %v133_v0  ;;  %s576_s26 = smov 1   ;;  %s577_s27 = smov 127  }
  0x39   : > { %v139_v3 = vrot.slane %v138_v1, 4  ;;  %v704_v17 = vand.u32 127, %v152_v16  ;;  %s409_s28 = sshll.u32 %s695_s21, 1  ;;  %s418_s29 = sshll.u32 %s611_s10, 5 }
  0x3a   : > { %v145_v4 = vsel %vm137_vm0, %v135_v2, 0.0  ;;  %s132_s30 = scalar_lea.vmem [#allocation5], %s409_s28  ;;  %s759_s5 = scalar_lea.hbm %s804_s1, %s418_s29 }
  0x3b   : > { %v140_v5 = vadd.f32 %v139_v3, %v138_v1  ;;  %v146_v6 = vrot.slane %v145_v4, 4  ;;  %v154_v18 = vadd.s32 128, %v704_v17  ;;  %vm199_vm1 = vcmp.lt.s32.totalorder %v704_v17, 112  ;;  %s331_s2 = sshll.u32 %s132_s30, 4  ;;  %s317_s11 = scalar_lea.sflag [#allocation4], %s695_s21  ;;  %s761_s2 = int_to_ptr.vmem [resolvable:$true] %s331_s2 }
  0x3c   : > { %vm179_vm2 = vcmp.lt.s32.totalorder %v704_v17, 16  ;;  %v159_v39 = vand.u32 15, %v704_v17  ;;  %vm216_vm4 = vcmp.lt.s32.totalorder %v704_v17, 1  ;;  %vm225_vm7 = vcmp.lt.s32.totalorder %v704_v17, 127  ;;  %s505_s13 = scalar_lea.vmem %s761_s2, 32  ;;  %p821_p11 = scmp.ne.s32.totalorder %s808_s18, 0 }
  0x3d   : > { %v141_v7 = vrot.slane %v140_v5, 2  ;;  %v147_v8 = vadd.f32 %v146_v6, %v145_v4  ;;  %vm182_vm3 = vcmp.ge.s32.totalorder %v154_v18, 240  ;;  %v166_v40 = vand.u32 15, %v154_v18  ;;  %p506_p6 = scmp.ne.s32.totalorder %s761_s2, %s505_s13  ;;  %s579_s10 = smov [#allocation5]  }
  0x3e   : > { %vm711_vm5 = vcmp.eq.s32.totalorder %v159_v39, 0  ;;  %vm720_vm8 = vcmp.eq.s32.totalorder %v159_v39, 15  ;;  %s509_s14 = sshll.u32 %s579_s10, 4  ;;  %s510_s14 = int_to_ptr.vmem [resolvable:$false] %s509_s14 }
  0x3f   : > { %v142_v9 = vadd.f32 %v141_v7, %v140_v5  ;;  %v148_v10 = vrot.slane %v147_v8, 2  ;;  %vm715_vm6 = vcmp.eq.s32.totalorder %v166_v40, 0  ;;  %vm724_vm9 = vcmp.eq.s32.totalorder %v166_v40, 15  ;;  %p507_p12 = pnand %p506_p6, %p821_p11  ;;  %s511_s16 = scalar_lea.vmem %s510_s14, 64 }
  0x40   : > { %p512_p7 = scmp.lt.s32.totalorder %s761_s2, %s510_s14  ;;  %p513_p10 = scmp.lt.s32.totalorder %s511_s16, %s505_s13 }
  0x41   : > { %v143_v11 = vrot.slane %v142_v9, 1  ;;  %v149_v12 = vadd.f32 %v148_v10, %v147_v8  ;;  %p508_p13 = pneg %p507_p12 }
  0x42   : > { %p514_p2 = por %p513_p10, %p512_p7 }
  0x43   : > { %v144_v13 = vadd.f32 %v143_v11, %v142_v9  ;;  %v150_v14 = vrot.slane %v149_v12, 1 }
  0x44   : > { %p515_p4 = pnand %p514_p2, %p508_p13 }
  0x45   : > { %195 = vrot.lane.b32.xlu1 %v144_v13, %s574_s25  ;;  %187 = vrot.lane.b32.xlu0 %v144_v13, %s575_s17  ;;  %v151_v15 = vadd.f32 %v150_v14, %v149_v12  ;;  %v204_v21 = vmul.f32 2.0, %v144_v13 }
  0x47   : > { %v205_v22 = vmul.f32 2.0, %v151_v15 }
  0x49   : > { %197 = vrot.lane.b32.xlu1 %v151_v15, %s574_s25  ;;  %189 = vrot.lane.b32.xlu0 %v151_v15, %s575_s17 }
  0xb7   : > { %v196_v19 = vpop.permute.xlu1 %195  ;;  %v188_v20 = vpop.permute.xlu0 %187 }
  0xbb   : > { %v198_v23 = vpop.permute.xlu1 %197  ;;  %v190_v24 = vpop.permute.xlu0 %189 }
  0xbc   : > { %v200_v25 = vsel %vm199_vm1, %v196_v19, %v198_v23  ;;  %v201_v26 = vsel %vm199_vm1, %v198_v23, %v196_v19  ;;  %v191_v27 = vsel %vm179_vm2, %v188_v20, %v190_v24  ;;  %v192_v28 = vsel %vm179_vm2, %v190_v24, %v188_v20 }
  0xbd   : > { %v203_v29 = vsel %vm182_vm3, 0.0, %v201_v26  ;;  %v193_v30 = vsel %vm179_vm2, 0.0, %v192_v28  ;;  %v207_v32 = vadd.f32 %v205_v22, %v191_v27 }
  0xbe   : > { %v206_v31 = vadd.f32 %v204_v21, %v193_v30  ;;  %v210_v33 = vsub.f32 %v200_v25, %v193_v30  ;;  %v211_v34 = vsub.f32 %v203_v29, %v191_v27  ;;  %v578_v30 = vmov 1966171168  }
  0xbf   : > { %v209_v36 = vadd.f32 %v207_v32, %v203_v29 }
  0xc0   : > { %230 = vrot.lane.b32.xlu0 %v210_v33, %s576_s26  ;;  %232 = vrot.lane.b32.xlu1 %v211_v34, %s576_s26  ;;  %v208_v35 = vadd.f32 %v206_v31, %v200_v25  ;;  %v248_v57 = vmul.f32 2.0, %v210_v33  ;;  %v249_v58 = vmul.f32 2.0, %v211_v34  ;;  %v297_v31 = vunpack.c.l.s4 %v578_v30 }
  0xc4   : > { %212 = vrot.lane.b32.xlu0 %v208_v35, %s576_s26  ;;  %214 = vrot.lane.b32.xlu1 %v209_v36, %s576_s26 }
  0xc8   : > { %221 = vrot.lane.b32.xlu0 %v208_v35, %s577_s27  ;;  %223 = vrot.lane.b32.xlu1 %v209_v36, %s577_s27  ;;  %v298_v36 = vunpack.c.0.s8 %v297_v31 }
  0xcc   : > { %238 = vrot.lane.b32.xlu0 %v210_v33, %s577_s27  ;;  %240 = vrot.lane.b32.xlu1 %v211_v34, %s577_s27 }
 0x132   : > { %v231_v37 = vpop.permute.xlu0 %230  ;;  %v233_v38 = vpop.permute.xlu1 %232 }
 0x133   : > { %v234_v45 = vsel %vm216_vm4, %v231_v37, %v233_v38  ;;  %v235_v46 = vsel %vm216_vm4, %v233_v38, %v231_v37  ;;  %v300_v38 = vshrl.u32 %v152_v16, 7 }
 0x134   : > { %v236_v49 = vsel %vm711_vm5, 0.0, %v235_v46  ;;  %v237_v50 = vsel %vm715_vm6, 0.0, %v234_v45 }
 0x135   : > { %v250_v61 = vadd.f32 %v248_v57, %v236_v49  ;;  %v251_v62 = vadd.f32 %v249_v58, %v237_v50  ;;  %v301_v43 = vsub.s32 %v298_v36, %v300_v38 }
 0x136   : > { %v213_v41 = vpop.permute.xlu0 %212  ;;  %v215_v42 = vpop.permute.xlu1 %214 }
 0x137   : > { %v217_v53 = vsel %vm216_vm4, %v213_v41, %v215_v42  ;;  %v218_v54 = vsel %vm216_vm4, %v215_v42, %v213_v41  ;;  %vm313_vm4 = vcmp.lt.s32.totalorder %v152_v16, 256 }
 0x138   : > { %v219_v63 = vsel %vm711_vm5, 0.0, %v218_v54  ;;  %v220_v0 = vsel %vm715_vm6, 0.0, %v217_v53 }
 0x13a   : > { %v222_v51 = vpop.permute.xlu0 %221  ;;  %v224_v52 = vpop.permute.xlu1 %223 }
 0x13b   : > { %v226_v55 = vsel %vm225_vm7, %v222_v51, %v224_v52  ;;  %v227_v56 = vsel %vm225_vm7, %v224_v52, %v222_v51 }
 0x13c   : > { %v228_v59 = vsel %vm720_vm8, 0.0, %v226_v55  ;;  %v229_v60 = vsel %vm724_vm9, 0.0, %v227_v56 }
 0x13d   : > { %v246_v3 = vsub.f32 %v228_v59, %v219_v63  ;;  %v247_v4 = vsub.f32 %v229_v60, %v220_v0 }
 0x13e   : > { %v239_v1 = vpop.permute.xlu0 %238  ;;  %v241_v2 = vpop.permute.xlu1 %240 }
 0x13f   : > { %v242_v5 = vsel %vm225_vm7, %v239_v1, %v241_v2  ;;  %v243_v6 = vsel %vm225_vm7, %v241_v2, %v239_v1  ;;  %v254_v11 = vmul.f32 %v246_v3, %v246_v3  ;;  %v255_v12 = vmul.f32 %v247_v4, %v247_v4 }
 0x140   : > { %v244_v7 = vsel %vm720_vm8, 0.0, %v242_v5  ;;  %v245_v8 = vsel %vm724_vm9, 0.0, %v243_v6 }
 0x141   : > { %v252_v9 = vadd.f32 %v250_v61, %v244_v7  ;;  %v253_v10 = vadd.f32 %v251_v62, %v245_v8 }
 0x143   : > { %v256_v13 = vmul.f32 %v252_v9, %v252_v9  ;;  %v257_v14 = vmul.f32 %v253_v10, %v253_v10 }
 0x145   : > { %v258_v15 = vadd.f32 %v256_v13, %v254_v11  ;;  %v259_v18 = vadd.f32 %v257_v14, %v255_v12 }
 0x147   : > { %471 = vrsqrt.f32 %v258_v15  ;;  %vm262_vm10 = vcmp.eq.f32.partialorder %v258_v15, inf  ;;  %v265_v21 = vand.u32 2147483648, %v258_v15  ;;  %vm264_vm11 = vcmp.eq.f32.partialorder %v258_v15, 0.0 }
 0x148   : > { %473 = vrsqrt.f32 %v259_v18  ;;  %vm269_vm12 = vcmp.eq.f32.partialorder %v259_v18, inf  ;;  %v272_v24 = vand.u32 2147483648, %v259_v18  ;;  %vm271_vm13 = vcmp.eq.f32.partialorder %v259_v18, 0.0 }
 0x151   : > { %v472_v19 = vpop.eup %471 }
 0x152   : > { %v474_v20 = vpop.eup %473  ;;  %v261_v17 = vmul.f32 %v472_v19, %v258_v15 }
 0x153   : > { %v268_v22 = vmul.f32 %v474_v20, %v259_v18 }
 0x154   : > { %v263_v23 = vsel %vm262_vm10, %v258_v15, %v261_v17 }
 0x155   : > { %v270_v25 = vsel %vm269_vm12, %v259_v18, %v268_v22  ;;  %v266_v26 = vsel %vm264_vm11, %v265_v21, %v263_v23 }
 0x156   : > { %v273_v27 = vsel %vm271_vm13, %v272_v24, %v270_v25  ;;  %v410_v28 = vadd.f32 -0.2, %v266_v26  ;;  %vm285_vm14 = vcmp.gt.f32.partialorder %v266_v26, 0.2  ;;  %vm287_vm15 = vcmp.lt.f32.partialorder %v266_v26, 0.7 }
 0x157   : > { %v411_v29 = vadd.f32 -0.2, %v273_v27  ;;  %vm286_vm0 = vcmp.gt.f32.partialorder %v273_v27, 0.2  ;;  %vm288_vm1 = vcmp.lt.f32.partialorder %v273_v27, 0.7  ;;  %vm289_vm2 = vmand %vm285_vm14, %vm287_vm15 }
 0x158   : > { %v277_v32 = vmul.f32 2.0, %v410_v28  ;;  %vm290_vm3 = vmand %vm286_vm0, %vm288_vm1 }
 0x159   : > { %v278_v33 = vmul.f32 2.0, %v411_v29 }
 0x15a   : > { %v279_v34 = vsub.f32 1.0, %v277_v32 }
 0x15b   : > { %v280_v35 = vsub.f32 1.0, %v278_v33 }
 0x15c   : > { %v281_v37 = vmul.f32 2.0, %v279_v34 }
 0x15d   : > { %v282_v39 = vmul.f32 2.0, %v280_v35 }
 0x15e   : > { %v283_v40 = vadd.f32 1.0, %v281_v37 }
 0x15f   : > { %v284_v41 = vadd.f32 1.0, %v282_v39 }
 0x160   : > { %v291_v42 = vsel %vm289_vm2, %v283_v40, 1.0 }
 0x161   : > { %v292_v44 = vsel %vm290_vm3, %v284_v41, 1.0 }
 0x162   : > { %v295_v45 = vcombine.low %v291_v42, %v292_v44 }
 0x164   : > { %v302_v46 = vrot.slane %v295_v45, %v301_v43 }
 0x166   : > { %v309_v47 = vrot.slane %v302_v46, %v301_v43 }
 0x168   : > { %315 = vst.msk [vmem:[%s132_s30] sm:$0x3] %vm313_vm4, %v309_v47 }
 0x169   : > { %518 = shalt.err (!%p515_p4)
}
 0x16a   : > { %s519_s20 = scalar_lea.hbm %s759_s5, 32  ;;  %s523_s23 = scalar_lea.hbm %s804_s1, 64 }
 0x16b   : > { %p520_p5 = scmp.ne.s32.totalorder %s759_s5, %s519_s20  ;;  %p524_p0 = scmp.lt.u32.totalorder %s759_s5, %s804_s1 }
 0x16c   : > { %p525_p1 = scmp.lt.u32.totalorder %s523_s23, %s519_s20  ;;  %p527_p6 = scmp.lt.u32.totalorder %s519_s20, %s759_s5 }
 0x16d   : > { %p521_p8 = pnand %p520_p5, %p821_p11 }
 0x16e   : > { %p526_p3 = por %p525_p1, %p524_p0 }
 0x16f   : > { %p522_p9 = pneg %p521_p8 }
 0x170   : > { %p528_p12 = por %p527_p6, %p526_p3 }
 0x172   : > { %p529_p13 = pnand %p528_p12, %p522_p9 }
 0x174   : > { %532 = shalt.err (!%p529_p13)
}
 0x175   : > { %421 = dma.vmem_to_hbm [thread:$0]  (%p821_p11), %s761_s2, 32, %s759_s5, %s317_s11  }
 0x176 PF: > { %s343_s17 = sand.u32 1, %s559_s6   ;;  %p822_p7 = scmp.ne.s32.totalorder %s809_s19, 0 }
 0x177   : > { %p823_p10 = scmp.ge.s32.totalorder %s571_s9, 2  ;;  %s344_s26 = scalar_lea.sflag [#allocation4], %s343_s17 }
 0x179   : > { %p428_p2 = pnand %p823_p10, %p822_p7 }
 0x17b   : > { %554 = dma.done.wait (!%p428_p2), %s344_s26, 32  }
 0x17c   : > { %556 = vsyncadd (!%p428_p2), %s344_s26, 4294967264  ;;  %p14_p4 = scmp.ge.s32.totalorder %s615_s12, 4   ;;  %s824_s6 = smov %s563_s7 }
 0x17d   : > { %s825_s7 = smov %s567_s8  ;;  %s826_s8 = smov %s627_s15 }
 0x17e   : > { %s827_s9 = smov %s615_s12  ;;  %16 = sbr.rel (!%p14_p4) target bundleno = 5 (0x5), region = 69 }
 0x185   :  { %349 = vsyncpa [#allocation3], 1 }
 0x186   :  { %351 = vsyncpa [#allocation3 + $0x1], 1 }
 0x187   :  { %352 = vsyncpa [#allocation4], 1 }
 0x188   :  { %354 = vsyncpa [#allocation4 + $0x1], 1 }

</bundles_post_ra>
